<compile_context>
chip_gen: v7x
topology: tpu7x:2x2x1
jax: 0.10.0
libtpu: 0.0.40
codegen_flags: <defaults>
</compile_context>

<pallas_src>
import jax
import jax.numpy as jnp
from jax.experimental import pallas as pl
from jax.experimental.pallas import tpu as pltpu

LANE = 128     # TPU vreg lane width
SUBLANE = 8    # f32 sublane count


def _ceil_to(n, m):
    return ((n + m - 1) // m) * m


def _cdiv(a, b):
    return -(-a // b)


# ------------------------------- kernel body --------------------------------
def decoders_kernel(x_ref, w12_ref, b12_ref, w3_ref, b3_ref, o_ref):
    # Fused Linear1+Linear2: h = X @ W12 + b12  (bf16 MXU operands, f32 acc).
    x = x_ref[...].astype(jnp.bfloat16)
    h = jnp.dot(x, w12_ref[...], preferred_element_type=jnp.float32)
    h = jnp.maximum(h + b12_ref[...], 0.0)                    # bias + ReLU, f32
    # Linear3: out = h @ W3 + b3  (compact C output columns).
    out = jnp.dot(h.astype(jnp.bfloat16), w3_ref[...],
                  preferred_element_type=jnp.float32)
    o_ref[...] = (out + b3_ref[...]).astype(o_ref.dtype)


# ------------------------- one-time parameter prep --------------------------
def prepare_decoder_params(w1, b1, w2, b2, w3, b3):
    """Fold Linear1/Linear2 (exact: no activation between them), pad the
    hidden dim to 128 lanes, cast MXU operands to bf16.  Call ONCE at init."""
    P, H = w1.shape
    C = w3.shape[1]
    f32 = jnp.float32
    w12 = w1.astype(f32) @ w2.astype(f32)                     # (P, H)
    b12 = b1.astype(f32) @ w2.astype(f32) + b2.astype(f32)    # (H,)
    Hp = max(LANE, _ceil_to(H, LANE))
    w12p = jnp.zeros((P, Hp), jnp.bfloat16).at[:, :H].set(w12.astype(jnp.bfloat16))
    b12p = jnp.zeros((1, Hp), f32).at[:, :H].set(b12)
    w3p = jnp.zeros((Hp, C), jnp.bfloat16).at[:H, :].set(w3.astype(jnp.bfloat16))
    b3p = b3.reshape(1, C).astype(f32)
    # Materialize now so nothing is recomputed per forward call.
    w12p, b12p, w3p, b3p = jax.block_until_ready((w12p, b12p, w3p, b3p))
    return {"w12": w12p, "b12": b12p, "w3": w3p, "b3": b3p,
            "P": int(P), "Hp": int(Hp), "C": int(C)}


# ------------------------------ batch tiling ---------------------------------
def _choose_tiling(batch, tm_max=1024):
    b8 = max(SUBLANE, _ceil_to(batch, SUBLANE))
    n_steps = max(1, _cdiv(b8, tm_max))
    if n_steps == 1 and b8 >= 2 * SUBLANE:
        n_steps = 2          # v7x: give both TensorCores a grid step
    tm = _ceil_to(_cdiv(b8, n_steps), SUBLANE)
    bp = n_steps * tm        # wastes < 1 tile of padded rows
    return tm, bp, n_steps


def _call_decoder(xp, prep, tm, n_steps, single_buffer_weights):
    P, Hp, C = prep["P"], prep["Hp"], prep["C"]
    Bp = xp.shape[0]
    wkw = {"pipeline_mode": pl.Buffered(1)} if single_buffer_weights else {}

    x_bytes = xp.dtype.itemsize
    vmem_est = (2 * tm * P * x_bytes + 2 * tm * C * 4
                + 2 * (P * Hp * 2 + Hp * 4 + Hp * C * 2 + C * 4))
    vmem_limit = int(min(100 * 2 ** 20, max(2 * vmem_est, 8 * 2 ** 20)))

    return pl.pallas_call(
        decoders_kernel,
        out_shape=jax.ShapeDtypeStruct((Bp, C), jnp.float32),
        grid=(n_steps,),
        in_specs=[
            pl.BlockSpec((tm, P), lambda i: (i, 0)),           # X tile (streamed)
            pl.BlockSpec((P, Hp), lambda i: (0, 0), **wkw),    # W12  (resident)
            pl.BlockSpec((1, Hp), lambda i: (0, 0), **wkw),    # b12  (resident)
            pl.BlockSpec((Hp, C), lambda i: (0, 0), **wkw),    # W3   (resident)
            pl.BlockSpec((1, C), lambda i: (0, 0), **wkw),     # b3   (resident)
        ],
        out_specs=pl.BlockSpec((tm, C), lambda i: (i, 0)),     # compact store
        compiler_params=pltpu.CompilerParams(
            dimension_semantics=("parallel",),
            vmem_limit_bytes=vmem_limit),
    )(xp, prep["w12"], prep["b12"], prep["w3"], prep["b3"])


def decoders_apply(prep, x, *, tm_max=1024):
    """Forward pass using weights prepared once by prepare_decoder_params."""
    B, P = x.shape
    assert P == prep["P"], "input feature dim mismatch"
    tm, Bp, n_steps = _choose_tiling(B, tm_max)
    if Bp != B:
        xp = jnp.zeros((Bp, P), x.dtype).at[:B, :].set(x)
    else:
        xp = x                                                 # no extra HBM copy
    try:
        out = _call_decoder(xp, prep, tm, n_steps, single_buffer_weights=True)
    except Exception:
        # pipeline_mode/Buffered(1) unsupported on this JAX -> default buffering.
        out = _call_decoder(xp, prep, tm, n_steps, single_buffer_weights=False)
    return out if Bp == B else out[:B]


def decoders_forward(x, w1, b1, w2, b2, w3, b3):
    """One-shot convenience; prefer prepare_decoder_params() + decoders_apply()."""
    return decoders_apply(prepare_decoder_params(w1, b1, w2, b2, w3, b3), x)


def init_params(key, input_channels, hidden_dimensions, probability_dimensions):
    """Deterministic init mimicking nn.Linear default (uniform +/- 1/sqrt(fan_in))."""
    ks = jax.random.split(key, 6)

    def lin(kw, kb, fan_in, fan_out):
        bound = 1.0 / jnp.sqrt(fan_in)
        w = jax.random.uniform(kw, (fan_in, fan_out), jnp.float32, -bound, bound)
        b = jax.random.uniform(kb, (fan_out,), jnp.float32, -bound, bound)
        return w, b

    w1, b1 = lin(ks[0], ks[1], probability_dimensions, hidden_dimensions)
    w2, b2 = lin(ks[2], ks[3], hidden_dimensions, hidden_dimensions)
    w3, b3 = lin(ks[4], ks[5], hidden_dimensions, input_channels)
    return w1, b1, w2, b2, w3, b3


if __name__ == "__main__":
    # Small shapes consistent with the module's forward pass.
    batch = 8
    input_channels = 4           # output dim of `out`
    hidden_dimensions = 32       # hidden dim
    probability_dimensions = 16  # input feature dim of X

    key = jax.random.PRNGKey(0)
    kx, kp = jax.random.split(key)
    x = jax.random.normal(kx, (batch, probability_dimensions), jnp.float32)
    params = init_params(kp, input_channels, hidden_dimensions, probability_dimensions)
    w1, b1, w2, b2, w3, b3 = params

    prep = prepare_decoder_params(*params)         # weight prep: once, at init
    out = jax.block_until_ready(decoders_apply(prep, x))

    # Pure-JAX f32 reference (module semantics: no act after layer1, ReLU after layer2).
    def ref_forward(xr):
        r = xr @ w1 + b1
        r = r @ w2 + b2
        r = jnp.maximum(r, 0.0)
        return r @ w3 + b3

    ref = ref_forward(x)
    assert out.shape == (batch, input_channels)
    # bf16 MXU operands -> loosened tolerance vs the f32 reference.
    assert jnp.allclose(out, ref, atol=3e-2, rtol=3e-2), "mismatch vs reference"

    # Also exercise the non-tile-aligned / multi-grid-step (dual-TC) path.
    x2 = jax.random.normal(jax.random.PRNGKey(1), (20, probability_dimensions),
                           jnp.float32)
    out2 = jax.block_until_ready(decoders_apply(prep, x2))
    ref2 = ref_forward(x2)
    assert out2.shape == (20, input_channels)
    assert jnp.allclose(out2, ref2, atol=3e-2, rtol=3e-2), "mismatch (padded path)"

    print("KERNEL_OK")
</pallas_src>

<mosaic_0001>
module attributes {stable_mosaic.version = 11 : i64} {
  func.func @decoders_kernel(%arg0: i32, %arg1: memref<8x16xf32, #tpu.memory_space<vmem>>, %arg2: memref<16x128xbf16, #tpu.memory_space<vmem>>, %arg3: memref<1x128xf32, #tpu.memory_space<vmem>>, %arg4: memref<128x4xbf16, #tpu.memory_space<vmem>>, %arg5: memref<1x4xf32, #tpu.memory_space<vmem>>, %arg6: memref<8x4xf32, #tpu.memory_space<vmem>>) attributes {dimension_semantics = [#tpu.dimension_semantics<parallel>], iteration_bounds = array<i64: 1>, scalar_prefetch = 0 : i64, scratch_operands = 0 : i64, tpu.core_type = #tpu.core_type<tc>, window_params = [{transform_indices = @transform_0, window_bounds = array<i64: 8, 16>}, {pipeline_mode = #tpu.pipeline_mode<synchronous>, transform_indices = @transform_1, window_bounds = array<i64: 16, 128>}, {pipeline_mode = #tpu.pipeline_mode<synchronous>, transform_indices = @transform_2, window_bounds = array<i64: 1, 128>}, {pipeline_mode = #tpu.pipeline_mode<synchronous>, transform_indices = @transform_3, window_bounds = array<i64: 128, 4>}, {pipeline_mode = #tpu.pipeline_mode<synchronous>, transform_indices = @transform_4, window_bounds = array<i64: 1, 4>}, {transform_indices = @transform_5, window_bounds = array<i64: 8, 4>}]} {
    %c0 = arith.constant 0 : index
    %c0_0 = arith.constant 0 : index
    %0 = vector.load %arg1[%c0, %c0_0] : memref<8x16xf32, #tpu.memory_space<vmem>>, vector<8x16xf32>
    %1 = arith.truncf %0 : vector<8x16xf32> to vector<8x16xbf16>
    %c0_1 = arith.constant 0 : index
    %c0_2 = arith.constant 0 : index
    %2 = vector.load %arg2[%c0_1, %c0_2] : memref<16x128xbf16, #tpu.memory_space<vmem>>, vector<16x128xbf16>
    %cst = arith.constant dense<0.000000e+00> : vector<8x128xf32>
    %3 = tpu.matmul %1, %2, %cst {dimension_numbers = #tpu.dot_dimension_numbers<[1], [0], [0], [1], [0, 0, 1, 1], [], []>} : vector<8x16xbf16>, vector<16x128xbf16>, vector<8x128xf32> -> vector<8x128xf32>
    %c0_3 = arith.constant 0 : index
    %c0_4 = arith.constant 0 : index
    %4 = vector.load %arg3[%c0_3, %c0_4] : memref<1x128xf32, #tpu.memory_space<vmem>>, vector<1x128xf32>
    %5 = vector.broadcast %4 : vector<1x128xf32> to vector<8x128xf32>
    %6 = arith.addf %3, %5 : vector<8x128xf32>
    %cst_5 = arith.constant 0.000000e+00 : f32
    %7 = vector.broadcast %cst_5 : f32 to vector<8x128xf32>
    %8 = arith.maximumf %6, %7 : vector<8x128xf32>
    %9 = arith.truncf %8 : vector<8x128xf32> to vector<8x128xbf16>
    %c0_6 = arith.constant 0 : index
    %c0_7 = arith.constant 0 : index
    %10 = vector.load %arg4[%c0_6, %c0_7] : memref<128x4xbf16, #tpu.memory_space<vmem>>, vector<128x4xbf16>
    %cst_8 = arith.constant dense<0.000000e+00> : vector<8x4xf32>
    %11 = tpu.matmul %9, %10, %cst_8 {dimension_numbers = #tpu.dot_dimension_numbers<[1], [0], [0], [1], [0, 0, 1, 1], [], []>} : vector<8x128xbf16>, vector<128x4xbf16>, vector<8x4xf32> -> vector<8x4xf32>
    %c0_9 = arith.constant 0 : index
    %c0_10 = arith.constant 0 : index
    %12 = vector.load %arg5[%c0_9, %c0_10] : memref<1x4xf32, #tpu.memory_space<vmem>>, vector<1x4xf32>
    %13 = vector.broadcast %12 : vector<1x4xf32> to vector<8x4xf32>
    %14 = arith.addf %11, %13 : vector<8x4xf32>
    %c0_11 = arith.constant 0 : index
    %c0_12 = arith.constant 0 : index
    %15 = vector.load %arg6[%c0_11, %c0_12] : memref<8x4xf32, #tpu.memory_space<vmem>>, vector<8x4xf32>
    tpu.vector_store %arg6[%c0_11, %c0_12], %14 {strides = array<i32>} : memref<8x4xf32, #tpu.memory_space<vmem>>, vector<8x4xf32>,
    return
  }
  func.func @transform_0(%arg0: i32) -> (i32, i32) {
    %c0_i32 = arith.constant 0 : i32
    %c0_i32_0 = arith.constant 0 : i32
    return %arg0, %c0_i32 : i32, i32
  }
  func.func @transform_1(%arg0: i32) -> (i32, i32) {
    %c0_i32 = arith.constant 0 : i32
    %c0_i32_0 = arith.constant 0 : i32
    %c0_i32_1 = arith.constant 0 : i32
    return %c0_i32, %c0_i32_0 : i32, i32
  }
  func.func @transform_2(%arg0: i32) -> (i32, i32) {
    %c0_i32 = arith.constant 0 : i32
    %c0_i32_0 = arith.constant 0 : i32
    %c0_i32_1 = arith.constant 0 : i32
    return %c0_i32, %c0_i32_0 : i32, i32
  }
  func.func @transform_3(%arg0: i32) -> (i32, i32) {
    %c0_i32 = arith.constant 0 : i32
    %c0_i32_0 = arith.constant 0 : i32
    %c0_i32_1 = arith.constant 0 : i32
    return %c0_i32, %c0_i32_0 : i32, i32
  }
  func.func @transform_4(%arg0: i32) -> (i32, i32) {
    %c0_i32 = arith.constant 0 : i32
    %c0_i32_0 = arith.constant 0 : i32
    %c0_i32_1 = arith.constant 0 : i32
    return %c0_i32, %c0_i32_0 : i32, i32
  }
  func.func @transform_5(%arg0: i32) -> (i32, i32) {
    %c0_i32 = arith.constant 0 : i32
    %c0_i32_0 = arith.constant 0 : i32
    return %arg0, %c0_i32 : i32, i32
  }
}

module attributes {stable_mosaic.version = 11 : i64} {
  func.func @decoders_kernel(%arg0: i32, %arg1: memref<8x16xf32, #tpu.memory_space<vmem>>, %arg2: memref<16x128xbf16, #tpu.memory_space<vmem>>, %arg3: memref<1x128xf32, #tpu.memory_space<vmem>>, %arg4: memref<128x4xbf16, #tpu.memory_space<vmem>>, %arg5: memref<1x4xf32, #tpu.memory_space<vmem>>, %arg6: memref<8x4xf32, #tpu.memory_space<vmem>>) attributes {dimension_semantics = [#tpu.dimension_semantics<parallel>], iteration_bounds = array<i64: 1>, scalar_prefetch = 0 : i64, scratch_operands = 0 : i64, tpu.core_type = #tpu.core_type<tc>, window_params = [{transform_indices = @transform_0, window_bounds = array<i64: 8, 16>}, {pipeline_mode = #tpu.pipeline_mode<synchronous>, transform_indices = @transform_1, window_bounds = array<i64: 16, 128>}, {pipeline_mode = #tpu.pipeline_mode<synchronous>, transform_indices = @transform_2, window_bounds = array<i64: 1, 128>}, {pipeline_mode = #tpu.pipeline_mode<synchronous>, transform_indices = @transform_3, window_bounds = array<i64: 128, 4>}, {pipeline_mode = #tpu.pipeline_mode<synchronous>, transform_indices = @transform_4, window_bounds = array<i64: 1, 4>}, {transform_indices = @transform_5, window_bounds = array<i64: 8, 4>}]} {
    %c0 = arith.constant 0 : index
    %c0_0 = arith.constant 0 : index
    %0 = vector.load %arg1[%c0, %c0_0] : memref<8x16xf32, #tpu.memory_space<vmem>>, vector<8x16xf32>
    %1 = arith.truncf %0 : vector<8x16xf32> to vector<8x16xbf16>
    %c0_1 = arith.constant 0 : index
    %c0_2 = arith.constant 0 : index
    %2 = vector.load %arg2[%c0_1, %c0_2] : memref<16x128xbf16, #tpu.memory_space<vmem>>, vector<16x128xbf16>
    %cst = arith.constant dense<0.000000e+00> : vector<8x128xf32>
    %3 = tpu.matmul %1, %2, %cst {dimension_numbers = #tpu.dot_dimension_numbers<[1], [0], [0], [1], [0, 0, 1, 1], [], []>} : vector<8x16xbf16>, vector<16x128xbf16>, vector<8x128xf32> -> vector<8x128xf32>
    %c0_3 = arith.constant 0 : index
    %c0_4 = arith.constant 0 : index
    %4 = vector.load %arg3[%c0_3, %c0_4] : memref<1x128xf32, #tpu.memory_space<vmem>>, vector<1x128xf32>
    %5 = vector.broadcast %4 : vector<1x128xf32> to vector<8x128xf32>
    %6 = arith.addf %3, %5 : vector<8x128xf32>
    %cst_5 = arith.constant 0.000000e+00 : f32
    %7 = vector.broadcast %cst_5 : f32 to vector<8x128xf32>
    %8 = arith.maximumf %6, %7 : vector<8x128xf32>
    %9 = arith.truncf %8 : vector<8x128xf32> to vector<8x128xbf16>
    %c0_6 = arith.constant 0 : index
    %c0_7 = arith.constant 0 : index
    %10 = vector.load %arg4[%c0_6, %c0_7] : memref<128x4xbf16, #tpu.memory_space<vmem>>, vector<128x4xbf16>
    %cst_8 = arith.constant dense<0.000000e+00> : vector<8x4xf32>
    %11 = tpu.matmul %9, %10, %cst_8 {dimension_numbers = #tpu.dot_dimension_numbers<[1], [0], [0], [1], [0, 0, 1, 1], [], []>} : vector<8x128xbf16>, vector<128x4xbf16>, vector<8x4xf32> -> vector<8x4xf32>
    %c0_9 = arith.constant 0 : index
    %c0_10 = arith.constant 0 : index
    %12 = vector.load %arg5[%c0_9, %c0_10] : memref<1x4xf32, #tpu.memory_space<vmem>>, vector<1x4xf32>
    %13 = vector.broadcast %12 : vector<1x4xf32> to vector<8x4xf32>
    %14 = arith.addf %11, %13 : vector<8x4xf32>
    %c0_11 = arith.constant 0 : index
    %c0_12 = arith.constant 0 : index
    %15 = vector.load %arg6[%c0_11, %c0_12] : memref<8x4xf32, #tpu.memory_space<vmem>>, vector<8x4xf32>
    tpu.vector_store %arg6[%c0_11, %c0_12], %14 {strides = array<i32>} : memref<8x4xf32, #tpu.memory_space<vmem>>, vector<8x4xf32>,
    return
  }
  func.func @transform_0(%arg0: i32) -> (i32, i32) {
    %c0_i32 = arith.constant 0 : i32
    %c0_i32_0 = arith.constant 0 : i32
    return %arg0, %c0_i32 : i32, i32
  }
  func.func @transform_1(%arg0: i32) -> (i32, i32) {
    %c0_i32 = arith.constant 0 : i32
    %c0_i32_0 = arith.constant 0 : i32
    %c0_i32_1 = arith.constant 0 : i32
    return %c0_i32, %c0_i32_0 : i32, i32
  }
  func.func @transform_2(%arg0: i32) -> (i32, i32) {
    %c0_i32 = arith.constant 0 : i32
    %c0_i32_0 = arith.constant 0 : i32
    %c0_i32_1 = arith.constant 0 : i32
    return %c0_i32, %c0_i32_0 : i32, i32
  }
  func.func @transform_3(%arg0: i32) -> (i32, i32) {
    %c0_i32 = arith.constant 0 : i32
    %c0_i32_0 = arith.constant 0 : i32
    %c0_i32_1 = arith.constant 0 : i32
    return %c0_i32, %c0_i32_0 : i32, i32
  }
  func.func @transform_4(%arg0: i32) -> (i32, i32) {
    %c0_i32 = arith.constant 0 : i32
    %c0_i32_0 = arith.constant 0 : i32
    %c0_i32_1 = arith.constant 0 : i32
    return %c0_i32, %c0_i32_0 : i32, i32
  }
  func.func @transform_5(%arg0: i32) -> (i32, i32) {
    %c0_i32 = arith.constant 0 : i32
    %c0_i32_0 = arith.constant 0 : i32
    return %arg0, %c0_i32 : i32, i32
  }
}

</mosaic_0001>

<bundles_post_ra>
// kernel: tpu_custom_call.1
= control target key start
LH: loop header
LB: loop body
LE: loop exit
PB: predicated region body
PF: predicated region fallthrough
CT: control target
= control target key end

     0   :  { %v261_v0 = vmov 0.0   ;;  %vm262_vm0 = vmmov 0   ;;  %vm38_vm1 = vcmask 130048   ;;  %vm195_vm2 = vcmask 31744   ;;  %s332_s1 = inlined_call_operand.vmem [shape: bf16[16,128], index: 1, kind: input, shape index: {}]   ;;  %s333_s0 = inlined_call_operand.vmem [shape: f32[8,16], index: 0, kind: input, shape index: {}]   ;;  %s334_s3 = inlined_call_operand.vmem [shape: bf16[128,4], index: 3, kind: input, shape index: {}]   ;;  %s335_s2 = inlined_call_operand.vmem [shape: f32[1,128], index: 2, kind: input, shape index: {}]   ;;  %s336_s4 = inlined_call_operand.vmem [shape: f32[1,4], index: 4, kind: input, shape index: {}]   ;;  %s337_s5 = inlined_call_operand.vmem [shape: f32[8,4], index: 5, kind: output, shape index: {}]  }
   0x1   :  { %224 = vmatprep.subr.bf16.mxu0 %v261_v0  ;;  %v252_v1 = vld [vmem:[%s332_s1] sm:$0xff]   ;;  %226 = vmatprep.mubr.msk.bf16.mxu0 %vm262_vm0, %v261_v0  ;;  %v254_v5 = vld [vmem:[%s334_s3 + $0x8] sm:$0xff]   ;;  %v255_v6 = vld [vmem:[%s334_s3 + $0x10] sm:$0xff]  }
   0x2   :  { %v21_v2 = vld [vmem:[%s333_s0] sm:$0xff]  ;;  %230 = vmatprep.subr.bf16.mxu1 %v261_v0  ;;  %246 = vmatprep.mubr.msk.bf16.mxu1 %vm262_vm0, %v261_v0  ;;  %v256_v7 = vld [vmem:[%s334_s3 + $0x18] sm:$0xff]   ;;  %v258_v9 = vld [vmem:[%s334_s3 + $0x28] sm:$0xff]  }
   0x3   :  { %225 = vmatpush3.bf16.msra.mxu0 %v252_v1  ;;  %v22_v3 = vpack.c.bf16 %v21_v2, %v21_v2  ;;  %v253_v4 = vld [vmem:[%s334_s3] sm:$0xff]   ;;  %v259_v10 = vld [vmem:[%s334_s3 + $0x30] sm:$0xff]   ;;  %v260_v11 = vld [vmem:[%s334_s3 + $0x38] sm:$0xff]  }
   0x4   :  { %231 = vmatpush3.bf16.msra.mxu1 %v253_v4  ;;  %v257_v8 = vld [vmem:[%s334_s3 + $0x20] sm:$0xff]  }
   0x5   :  { %232 = vmatprep.subr.bf16.mxu1 %v261_v0  ;;  %v201_v12 = vld [vmem:[%s335_s2] ss:$0 sm:$0xff] }
   0x6   :  { %227 = vmatmul.mubr.msk.bf16.vlgmr.msra.gmra.mrb[0].mxu0 %vm38_vm1, %v22_v3  ;;  %v204_v20 = vld [vmem:[%s336_s4] ss:$0 sm:$0xff] }
   0x8   :  { %233 = vmatpush3.bf16.msra.mxu1 %v254_v5 }
   0x9   :  { %234 = vmatprep.subr.bf16.mxu1 %v261_v0 }
   0xc   :  { %235 = vmatpush3.bf16.msra.mxu1 %v255_v6 }
   0xd   :  { %236 = vmatprep.subr.bf16.mxu1 %v261_v0 }
  0x10   :  { %237 = vmatpush3.bf16.msra.mxu1 %v256_v7 }
  0x11   :  { %238 = vmatprep.subr.bf16.mxu1 %v261_v0 }
  0x14   :  { %239 = vmatpush3.bf16.msra.mxu1 %v257_v8 }
  0x15   :  { %240 = vmatprep.subr.bf16.mxu1 %v261_v0 }
  0x18   :  { %241 = vmatpush3.bf16.msra.mxu1 %v258_v9 }
  0x19   :  { %242 = vmatprep.subr.bf16.mxu1 %v261_v0 }
  0x1c   :  { %243 = vmatpush3.bf16.msra.mxu1 %v259_v10 }
  0x1d   :  { %244 = vmatprep.subr.bf16.mxu1 %v261_v0 }
  0x20   :  { %245 = vmatpush3.bf16.msra.mxu1 %v260_v11 }
  0xd9   :  { %v76_v13 = vpop.f32.mrb[0].mxu0 }
  0xda   :  { %v77_v14 = vadd.f32 %v201_v12, %v76_v13  ;;  %v228_v15 = vpop.f32.mrb[1].mxu0 }
  0xdb   :  { %v79_v16 = vpop.f32.mrb[2].mxu0 }
  0xdc   :  { %v82_v17 = vmax.f32 %v77_v14, 0.0  ;;  %v229_v18 = vpop.f32.mrb[3].mxu0 }
  0xde   :  { %v83_v19 = vpack.c.bf16 %v82_v17, %v82_v17 }
  0xe0   :  { %247 = vmatmul.mubr.bf16.vlgmr.msra.gmra.mrb[0].mxu1 %v83_v19 }
 0x1b3   :  { %v189_v21 = vpop.f32.mrb[0].mxu1 }
 0x1b4   :  { %v190_v22 = vadd.f32 %v204_v20, %v189_v21  ;;  %v248_v23 = vpop.f32.mrb[1].mxu1 }
 0x1b5   :  { %v192_v24 = vpop.f32.mrb[2].mxu1 }
 0x1b6   :  { %196 = vst.msk [vmem:[%s337_s5] sm:$0xff] %vm195_vm2, %v190_v22  ;;  %v249_v25 = vpop.f32.mrb[3].mxu1 }

// kernel: tpu_custom_call.1
= control target key start
LH: loop header
LB: loop body
LE: loop exit
PB: predicated region body
PF: predicated region fallthrough
CT: control target
= control target key end

     0   :  { %v261_v0 = vmov 0.0   ;;  %vm262_vm0 = vmmov 0   ;;  %vm38_vm1 = vcmask 130048   ;;  %vm195_vm2 = vcmask 31744   ;;  %s332_s1 = inlined_call_operand.vmem [shape: bf16[16,128], index: 1, kind: input, shape index: {}]   ;;  %s333_s0 = inlined_call_operand.vmem [shape: f32[8,16], index: 0, kind: input, shape index: {}]   ;;  %s334_s3 = inlined_call_operand.vmem [shape: bf16[128,4], index: 3, kind: input, shape index: {}]   ;;  %s335_s2 = inlined_call_operand.vmem [shape: f32[1,128], index: 2, kind: input, shape index: {}]   ;;  %s336_s4 = inlined_call_operand.vmem [shape: f32[1,4], index: 4, kind: input, shape index: {}]   ;;  %s337_s5 = inlined_call_operand.vmem [shape: f32[8,4], index: 5, kind: output, shape index: {}]  }
   0x1   :  { %224 = vmatprep.subr.bf16.mxu0 %v261_v0  ;;  %v252_v1 = vld [vmem:[%s332_s1] sm:$0xff]   ;;  %226 = vmatprep.mubr.msk.bf16.mxu0 %vm262_vm0, %v261_v0  ;;  %v254_v5 = vld [vmem:[%s334_s3 + $0x8] sm:$0xff]   ;;  %v255_v6 = vld [vmem:[%s334_s3 + $0x10] sm:$0xff]  }
   0x2   :  { %v21_v2 = vld [vmem:[%s333_s0] sm:$0xff]  ;;  %230 = vmatprep.subr.bf16.mxu1 %v261_v0  ;;  %246 = vmatprep.mubr.msk.bf16.mxu1 %vm262_vm0, %v261_v0  ;;  %v256_v7 = vld [vmem:[%s334_s3 + $0x18] sm:$0xff]   ;;  %v258_v9 = vld [vmem:[%s334_s3 + $0x28] sm:$0xff]  }
   0x3   :  { %225 = vmatpush3.bf16.msra.mxu0 %v252_v1  ;;  %v22_v3 = vpack.c.bf16 %v21_v2, %v21_v2  ;;  %v253_v4 = vld [vmem:[%s334_s3] sm:$0xff]   ;;  %v259_v10 = vld [vmem:[%s334_s3 + $0x30] sm:$0xff]   ;;  %v260_v11 = vld [vmem:[%s334_s3 + $0x38] sm:$0xff]  }
   0x4   :  { %231 = vmatpush3.bf16.msra.mxu1 %v253_v4  ;;  %v257_v8 = vld [vmem:[%s334_s3 + $0x20] sm:$0xff]  }
   0x5   :  { %232 = vmatprep.subr.bf16.mxu1 %v261_v0  ;;  %v201_v12 = vld [vmem:[%s335_s2] ss:$0 sm:$0xff] }
   0x6   :  { %227 = vmatmul.mubr.msk.bf16.vlgmr.msra.gmra.mrb[0].mxu0 %vm38_vm1, %v22_v3  ;;  %v204_v20 = vld [vmem:[%s336_s4] ss:$0 sm:$0xff] }
   0x8   :  { %233 = vmatpush3.bf16.msra.mxu1 %v254_v5 }
   0x9   :  { %234 = vmatprep.subr.bf16.mxu1 %v261_v0 }
   0xc   :  { %235 = vmatpush3.bf16.msra.mxu1 %v255_v6 }
   0xd   :  { %236 = vmatprep.subr.bf16.mxu1 %v261_v0 }
  0x10   :  { %237 = vmatpush3.bf16.msra.mxu1 %v256_v7 }
  0x11   :  { %238 = vmatprep.subr.bf16.mxu1 %v261_v0 }
  0x14   :  { %239 = vmatpush3.bf16.msra.mxu1 %v257_v8 }
  0x15   :  { %240 = vmatprep.subr.bf16.mxu1 %v261_v0 }
  0x18   :  { %241 = vmatpush3.bf16.msra.mxu1 %v258_v9 }
  0x19   :  { %242 = vmatprep.subr.bf16.mxu1 %v261_v0 }
  0x1c   :  { %243 = vmatpush3.bf16.msra.mxu1 %v259_v10 }
  0x1d   :  { %244 = vmatprep.subr.bf16.mxu1 %v261_v0 }
  0x20   :  { %245 = vmatpush3.bf16.msra.mxu1 %v260_v11 }
  0xd9   :  { %v76_v13 = vpop.f32.mrb[0].mxu0 }
  0xda   :  { %v77_v14 = vadd.f32 %v201_v12, %v76_v13  ;;  %v228_v15 = vpop.f32.mrb[1].mxu0 }
  0xdb   :  { %v79_v16 = vpop.f32.mrb[2].mxu0 }
  0xdc   :  { %v82_v17 = vmax.f32 %v77_v14, 0.0  ;;  %v229_v18 = vpop.f32.mrb[3].mxu0 }
  0xde   :  { %v83_v19 = vpack.c.bf16 %v82_v17, %v82_v17 }
  0xe0   :  { %247 = vmatmul.mubr.bf16.vlgmr.msra.gmra.mrb[0].mxu1 %v83_v19 }
 0x1b3   :  { %v189_v21 = vpop.f32.mrb[0].mxu1 }
 0x1b4   :  { %v190_v22 = vadd.f32 %v204_v20, %v189_v21  ;;  %v248_v23 = vpop.f32.mrb[1].mxu1 }
 0x1b5   :  { %v192_v24 = vpop.f32.mrb[2].mxu1 }
 0x1b6   :  { %196 = vst.msk [vmem:[%s337_s5] sm:$0xff] %vm195_vm2, %v190_v22  ;;  %v249_v25 = vpop.f32.mrb[3].mxu1 }

</bundles_post_ra>
